<compile_context>
chip_gen: v6e
topology: v6e:2x2x1
jax: 0.10.0
libtpu: 0.0.40
codegen_flags: <defaults>
</compile_context>

<pallas_src>
import functools
import math

import jax
import jax.numpy as jnp
from jax.experimental import pallas as pl
from jax.experimental.pallas import tpu as pltpu


def _fused_gumbel_kernel(x_ref, w_ref, b_ref, g_ref, out_ref, *, head_slices):
    """One batch tile: matmul for all heads + per-head hard Gumbel argmax."""
    x = x_ref[...]                      # (TB, D_in)   f32
    w = w_ref[...]                      # (D_in, P)    f32 (zero-padded cols)
    b = b_ref[...]                      # (1, P)       f32 (zero-padded cols)
    g = g_ref[...]                      # (TB, P)      f32 Gumbel(0,1) noise

    # Fused linear layer for every head (single MXU pass, f32 accumulation);
    # bias added once on the full lane-dense tile.
    z = jnp.dot(x, w, preferred_element_type=jnp.float32) + b   # (TB, P)

    # Perturbed scores.  Within each head, argmax(z + g) == argmax of the
    # PyTorch (log_softmax(z) + g) / tau, so this is the forward one-hot.
    score = z + g

    col = jax.lax.broadcasted_iota(jnp.int32, score.shape, 1)
    big = jnp.iinfo(jnp.int32).max
    neg_inf = jnp.float32(-jnp.inf)

    out = jnp.zeros(score.shape, jnp.float32)
    # Static unrolled loop over heads; everything stays on full-width
    # (TB, P) vregs (lane-dense), padded columns are masked out.
    for off, d in head_slices:
        mask = (col >= off) & (col < off + d)
        s = jnp.where(mask, score, neg_inf)
        smax = jnp.max(s, axis=1, keepdims=True)
        # First max index within the head (torch.max tie-breaking).
        idx = jnp.min(jnp.where(s == smax, col, big), axis=1, keepdims=True)
        out = out + (col == idx).astype(jnp.float32)

    out_ref[...] = out.astype(out_ref.dtype)


def multi_gumbel_forward(x, w_cat, b_cat, gumbel, head_slices, *, batch_tile=None):
    """Fused forward for all categorical heads.

    x:        (B, D_in) f32
    w_cat:    (D_in, P) f32, per-head weights concatenated + zero-padded to P
    b_cat:    (1, P)    f32
    gumbel:   (B, P)    f32 Gumbel(0,1) noise
    Returns:  (B, P)    f32; caller slices off the padding.
    """
    batch, input_dim = x.shape
    p = w_cat.shape[1]

    if batch_tile is None:
        # Whole batch in one tile when small; otherwise 256-row tiles
        # (multiple of 8 sublanes, comfortably inside v7x's 64 MiB VMEM
        # even with double buffering at these widths).
        batch_tile = batch if batch <= 256 else 256
    tb = batch_tile
    grid = (pl.cdiv(batch, tb),)

    kernel = functools.partial(_fused_gumbel_kernel,
                               head_slices=tuple(head_slices))

    return pl.pallas_call(
        kernel,
        out_shape=jax.ShapeDtypeStruct((batch, p), jnp.float32),
        grid=grid,
        in_specs=[
            pl.BlockSpec((tb, input_dim), lambda i: (i, 0)),   # x      (tiled)
            pl.BlockSpec((input_dim, p), lambda i: (0, 0)),    # W      (resident)
            pl.BlockSpec((1, p), lambda i: (0, 0)),            # bias   (resident)
            pl.BlockSpec((tb, p), lambda i: (i, 0)),           # noise  (tiled)
        ],
        out_specs=pl.BlockSpec((tb, p), lambda i: (i, 0)),
        compiler_params=pltpu.CompilerParams(
            dimension_semantics=("parallel",)),
    )(x, w_cat, b_cat, gumbel)


class MultiCategoryGumbelSoftmaxPallas:
    """JAX/Pallas port of the PyTorch MultiCategoryGumbelSoftmax forward pass."""

    def __init__(self, input_dim, output_dims, tau=2.0 / 3.0, key=None):
        self.input_dim = int(input_dim)
        self.output_dims = list(output_dims)
        self.total_out = sum(self.output_dims)
        # Pad the fused output width up to a multiple of 128 lanes so the
        # kernel's store path is lane-dense (unmasked vst).
        self.padded_out = max(128, -(-self.total_out // 128) * 128)
        # tau only rescales y_soft; the hard forward output is tau-invariant.
        self.tau = float(tau)

        if key is None:
            key = jax.random.PRNGKey(0)

        # Deterministic init matching torch.nn.Linear default:
        # U(-1/sqrt(fan_in), 1/sqrt(fan_in)) for weight and bias.
        bound = 1.0 / math.sqrt(self.input_dim)
        ws, bs = [], []
        for d_out in self.output_dims:
            key, kw, kb = jax.random.split(key, 3)
            ws.append(jax.random.uniform(kw, (self.input_dim, d_out),
                                         jnp.float32, -bound, bound))
            bs.append(jax.random.uniform(kb, (1, d_out),
                                         jnp.float32, -bound, bound))

        w_cat = jnp.concatenate(ws, axis=1)                       # (D_in, total)
        b_cat = jnp.concatenate(bs, axis=1)                       # (1, total)
        pad = self.padded_out - self.total_out
        self.w_cat = jnp.pad(w_cat, ((0, 0), (0, pad)))           # (D_in, P)
        self.b_cat = jnp.pad(b_cat, ((0, 0), (0, pad)))           # (1, P)

        # Static (offset, size) slice for each head inside the fused width.
        offs = []
        off = 0
        for d in self.output_dims:
            offs.append((off, d))
            off += d
        self.head_slices = tuple(offs)

    def __call__(self, x, key):
        batch = x.shape[0]
        # Gumbel(0,1) == -log(Exp(1)) noise, same distribution as
        # torch.empty_like(logits).exponential_().log().neg(); one draw
        # covers every head (and the padded columns, which are masked out).
        gumbel = jax.random.gumbel(key, (batch, self.padded_out), jnp.float32)
        out_padded = multi_gumbel_forward(
            x.astype(jnp.float32), self.w_cat, self.b_cat, gumbel,
            self.head_slices)
        return out_padded[:, :self.total_out]


if __name__ == "__main__":
    batch = 8
    input_dim = 32
    output_dims = [8, 16, 8]

    key = jax.random.PRNGKey(0)
    kx, kparams, knoise = jax.random.split(key, 3)
    x = jax.random.normal(kx, (batch, input_dim), dtype=jnp.float32)

    model = MultiCategoryGumbelSoftmaxPallas(input_dim, output_dims,
                                             tau=2.0 / 3.0, key=kparams)
    out = model(x, knoise)
    out = jax.block_until_ready(out)

    # Sanity checks: shape and that each head's slice is an exact one-hot row.
    assert out.shape == (batch, sum(output_dims)), out.shape
    off = 0
    for d in output_dims:
        seg = out[:, off:off + d]
        assert jnp.all(jnp.sum(seg, axis=1) == 1.0)
        assert bool(jnp.all((seg == 0.0) | (seg == 1.0)))
        off += d

    print("KERNEL_OK")
</pallas_src>

<mosaic_0001>
module attributes {stable_mosaic.version = 11 : i64} {
  func.func @_fused_gumbel_kernel(%arg0: i32, %arg1: memref<8x32xf32, #tpu.memory_space<vmem>>, %arg2: memref<32x128xf32, #tpu.memory_space<vmem>>, %arg3: memref<1x128xf32, #tpu.memory_space<vmem>>, %arg4: memref<8x128xf32, #tpu.memory_space<vmem>>, %arg5: memref<8x128xf32, #tpu.memory_space<vmem>>) attributes {dimension_semantics = [#tpu.dimension_semantics<parallel>], iteration_bounds = array<i64: 1>, scalar_prefetch = 0 : i64, scratch_operands = 0 : i64, tpu.core_type = #tpu.core_type<tc>, window_params = [{transform_indices = @transform_0, window_bounds = array<i64: 8, 32>}, {pipeline_mode = #tpu.pipeline_mode<synchronous>, transform_indices = @transform_1, window_bounds = array<i64: 32, 128>}, {pipeline_mode = #tpu.pipeline_mode<synchronous>, transform_indices = @transform_2, window_bounds = array<i64: 1, 128>}, {transform_indices = @transform_3, window_bounds = array<i64: 8, 128>}, {transform_indices = @transform_4, window_bounds = array<i64: 8, 128>}]} {
    %c0 = arith.constant 0 : index
    %c0_0 = arith.constant 0 : index
    %0 = vector.load %arg1[%c0, %c0_0] : memref<8x32xf32, #tpu.memory_space<vmem>>, vector<8x32xf32>
    %c0_1 = arith.constant 0 : index
    %c0_2 = arith.constant 0 : index
    %1 = vector.load %arg2[%c0_1, %c0_2] : memref<32x128xf32, #tpu.memory_space<vmem>>, vector<32x128xf32>
    %c0_3 = arith.constant 0 : index
    %c0_4 = arith.constant 0 : index
    %2 = vector.load %arg3[%c0_3, %c0_4] : memref<1x128xf32, #tpu.memory_space<vmem>>, vector<1x128xf32>
    %c0_5 = arith.constant 0 : index
    %c0_6 = arith.constant 0 : index
    %3 = vector.load %arg4[%c0_5, %c0_6] : memref<8x128xf32, #tpu.memory_space<vmem>>, vector<8x128xf32>
    %cst = arith.constant dense<0.000000e+00> : vector<8x128xf32>
    %4 = tpu.matmul %0, %1, %cst {dimension_numbers = #tpu.dot_dimension_numbers<[1], [0], [0], [1], [0, 0, 1, 1], [], []>} : vector<8x32xf32>, vector<32x128xf32>, vector<8x128xf32> -> vector<8x128xf32>
    %5 = vector.broadcast %2 : vector<1x128xf32> to vector<8x128xf32>
    %6 = arith.addf %4, %5 : vector<8x128xf32>
    %7 = arith.addf %6, %3 : vector<8x128xf32>
    %8 = tpu.iota {dimensions = array<i32: 1>} : vector<8x128xi32>
    %cst_7 = arith.constant 0.000000e+00 : f32
    %9 = vector.broadcast %cst_7 : f32 to vector<8x128xf32>
    %c0_i32 = arith.constant 0 : i32
    %10 = vector.broadcast %c0_i32 : i32 to vector<8x128xi32>
    %11 = arith.cmpi sge, %8, %10 : vector<8x128xi32>
    %c8_i32 = arith.constant 8 : i32
    %12 = vector.broadcast %c8_i32 : i32 to vector<8x128xi32>
    %13 = arith.cmpi slt, %8, %12 : vector<8x128xi32>
    %14 = arith.andi %11, %13 : vector<8x128xi1>
    %cst_8 = arith.constant 0xFF800000 : f32
    %15 = vector.broadcast %cst_8 : f32 to vector<8x128xf32>
    %16 = arith.select %14, %7, %15 : vector<8x128xi1>, vector<8x128xf32>
    %cst_9 = arith.constant dense<0xFF800000> : vector<8xf32>
    %17 = vector.multi_reduction <maximumf>, %16, %cst_9 [1] : vector<8x128xf32> to vector<8xf32>
    %18 = vector.shape_cast %17 : vector<8xf32> to vector<8x1xf32>
    %19 = vector.broadcast %18 : vector<8x1xf32> to vector<8x128xf32>
    %20 = arith.cmpf oeq, %16, %19 : vector<8x128xf32>
    %c2147483647_i32 = arith.constant 2147483647 : i32
    %21 = vector.broadcast %c2147483647_i32 : i32 to vector<8x128xi32>
    %22 = arith.select %20, %8, %21 : vector<8x128xi1>, vector<8x128xi32>
    %cst_10 = arith.constant dense<2147483647> : vector<8xi32>
    %23 = vector.multi_reduction <minsi>, %22, %cst_10 [1] : vector<8x128xi32> to vector<8xi32>
    %24 = vector.shape_cast %23 : vector<8xi32> to vector<8x1xi32>
    %25 = vector.broadcast %24 : vector<8x1xi32> to vector<8x128xi32>
    %26 = arith.cmpi eq, %8, %25 : vector<8x128xi32>
    %27 = arith.extui %26 : vector<8x128xi1> to vector<8x128xi32>
    %28 = arith.sitofp %27 : vector<8x128xi32> to vector<8x128xf32>
    %29 = arith.addf %9, %28 : vector<8x128xf32>
    %c8_i32_11 = arith.constant 8 : i32
    %30 = vector.broadcast %c8_i32_11 : i32 to vector<8x128xi32>
    %31 = arith.cmpi sge, %8, %30 : vector<8x128xi32>
    %c24_i32 = arith.constant 24 : i32
    %32 = vector.broadcast %c24_i32 : i32 to vector<8x128xi32>
    %33 = arith.cmpi slt, %8, %32 : vector<8x128xi32>
    %34 = arith.andi %31, %33 : vector<8x128xi1>
    %cst_12 = arith.constant 0xFF800000 : f32
    %35 = vector.broadcast %cst_12 : f32 to vector<8x128xf32>
    %36 = arith.select %34, %7, %35 : vector<8x128xi1>, vector<8x128xf32>
    %cst_13 = arith.constant dense<0xFF800000> : vector<8xf32>
    %37 = vector.multi_reduction <maximumf>, %36, %cst_13 [1] : vector<8x128xf32> to vector<8xf32>
    %38 = vector.shape_cast %37 : vector<8xf32> to vector<8x1xf32>
    %39 = vector.broadcast %38 : vector<8x1xf32> to vector<8x128xf32>
    %40 = arith.cmpf oeq, %36, %39 : vector<8x128xf32>
    %c2147483647_i32_14 = arith.constant 2147483647 : i32
    %41 = vector.broadcast %c2147483647_i32_14 : i32 to vector<8x128xi32>
    %42 = arith.select %40, %8, %41 : vector<8x128xi1>, vector<8x128xi32>
    %cst_15 = arith.constant dense<2147483647> : vector<8xi32>
    %43 = vector.multi_reduction <minsi>, %42, %cst_15 [1] : vector<8x128xi32> to vector<8xi32>
    %44 = vector.shape_cast %43 : vector<8xi32> to vector<8x1xi32>
    %45 = vector.broadcast %44 : vector<8x1xi32> to vector<8x128xi32>
    %46 = arith.cmpi eq, %8, %45 : vector<8x128xi32>
    %47 = arith.extui %46 : vector<8x128xi1> to vector<8x128xi32>
    %48 = arith.sitofp %47 : vector<8x128xi32> to vector<8x128xf32>
    %49 = arith.addf %29, %48 : vector<8x128xf32>
    %c24_i32_16 = arith.constant 24 : i32
    %50 = vector.broadcast %c24_i32_16 : i32 to vector<8x128xi32>
    %51 = arith.cmpi sge, %8, %50 : vector<8x128xi32>
    %c32_i32 = arith.constant 32 : i32
    %52 = vector.broadcast %c32_i32 : i32 to vector<8x128xi32>
    %53 = arith.cmpi slt, %8, %52 : vector<8x128xi32>
    %54 = arith.andi %51, %53 : vector<8x128xi1>
    %cst_17 = arith.constant 0xFF800000 : f32
    %55 = vector.broadcast %cst_17 : f32 to vector<8x128xf32>
    %56 = arith.select %54, %7, %55 : vector<8x128xi1>, vector<8x128xf32>
    %cst_18 = arith.constant dense<0xFF800000> : vector<8xf32>
    %57 = vector.multi_reduction <maximumf>, %56, %cst_18 [1] : vector<8x128xf32> to vector<8xf32>
    %58 = vector.shape_cast %57 : vector<8xf32> to vector<8x1xf32>
    %59 = vector.broadcast %58 : vector<8x1xf32> to vector<8x128xf32>
    %60 = arith.cmpf oeq, %56, %59 : vector<8x128xf32>
    %c2147483647_i32_19 = arith.constant 2147483647 : i32
    %61 = vector.broadcast %c2147483647_i32_19 : i32 to vector<8x128xi32>
    %62 = arith.select %60, %8, %61 : vector<8x128xi1>, vector<8x128xi32>
    %cst_20 = arith.constant dense<2147483647> : vector<8xi32>
    %63 = vector.multi_reduction <minsi>, %62, %cst_20 [1] : vector<8x128xi32> to vector<8xi32>
    %64 = vector.shape_cast %63 : vector<8xi32> to vector<8x1xi32>
    %65 = vector.broadcast %64 : vector<8x1xi32> to vector<8x128xi32>
    %66 = arith.cmpi eq, %8, %65 : vector<8x128xi32>
    %67 = arith.extui %66 : vector<8x128xi1> to vector<8x128xi32>
    %68 = arith.sitofp %67 : vector<8x128xi32> to vector<8x128xf32>
    %69 = arith.addf %49, %68 : vector<8x128xf32>
    %c0_21 = arith.constant 0 : index
    %c0_22 = arith.constant 0 : index
    %70 = vector.load %arg5[%c0_21, %c0_22] : memref<8x128xf32, #tpu.memory_space<vmem>>, vector<8x128xf32>
    tpu.vector_store %arg5[%c0_21, %c0_22], %69 {strides = array<i32>} : memref<8x128xf32, #tpu.memory_space<vmem>>, vector<8x128xf32>,
    return
  }
  func.func @transform_0(%arg0: i32) -> (i32, i32) {
    %c0_i32 = arith.constant 0 : i32
    %c0_i32_0 = arith.constant 0 : i32
    return %arg0, %c0_i32 : i32, i32
  }
  func.func @transform_1(%arg0: i32) -> (i32, i32) {
    %c0_i32 = arith.constant 0 : i32
    %c0_i32_0 = arith.constant 0 : i32
    %c0_i32_1 = arith.constant 0 : i32
    return %c0_i32, %c0_i32_0 : i32, i32
  }
  func.func @transform_2(%arg0: i32) -> (i32, i32) {
    %c0_i32 = arith.constant 0 : i32
    %c0_i32_0 = arith.constant 0 : i32
    %c0_i32_1 = arith.constant 0 : i32
    return %c0_i32, %c0_i32_0 : i32, i32
  }
  func.func @transform_3(%arg0: i32) -> (i32, i32) {
    %c0_i32 = arith.constant 0 : i32
    %c0_i32_0 = arith.constant 0 : i32
    return %arg0, %c0_i32 : i32, i32
  }
  func.func @transform_4(%arg0: i32) -> (i32, i32) {
    %c0_i32 = arith.constant 0 : i32
    %c0_i32_0 = arith.constant 0 : i32
    return %arg0, %c0_i32 : i32, i32
  }
}

</mosaic_0001>

<bundles_post_ra>
// kernel: tpu_custom_call.1
= control target key start
LH: loop header
LB: loop body
LE: loop exit
PB: predicated region body
PF: predicated region fallthrough
CT: control target
= control target key end

     0   :  { %9 = vsyncpa [#allocation3], 0  ;;  %s424_s0 = inlined_call_operand.hbm [shape: f32[8,32], index: 0, kind: input, shape index: {}]   ;;  %s425_s1 = inlined_call_operand.hbm [shape: f32[32,128], index: 1, kind: input, shape index: {}]   ;;  %s426_s2 = inlined_call_operand.vmem [shape: f32[1,128], index: 2, kind: input, shape index: {}]   ;;  %s427_s3 = inlined_call_operand.hbm [shape: f32[8,128], index: 3, kind: input, shape index: {}]   ;;  %s428_s4 = inlined_call_operand.hbm [shape: f32[8,128], index: 4, kind: output, shape index: {}]  }
   0x1   :  { %10 = vsyncpa [#allocation6], 0 }
   0x2   :  { %11 = vsyncpa [#allocation4], 0  ;;  %s355_s15 = smov [#allocation5]  }
   0x3   :  { %s27_s16 = sshll.u32 %s355_s15, 4  ;;  %s28_s16 = int_to_ptr.vmem [resolvable:$true] %s27_s16 }
   0x4   :  { %s277_s17 = scalar_lea.vmem %s28_s16, 512  ;;  %p282_p1 = scmp.lt.s32.totalorder %s28_s16, %s28_s16 }
   0x5   :  { %p278_p0 = scmp.ne.s32.totalorder %s28_s16, %s277_s17  ;;  %p283_p2 = scmp.lt.s32.totalorder %s277_s17, %s277_s17 }
   0x7   :  { %p284_p3 = por %p283_p2, %p282_p1 }
   0x9   :  { %p285_p4 = pnand %p284_p3, %p278_p0 }
   0xb   :  { %288 = shalt.err (!%p285_p4)
}
   0xc   :  { %s356_s18 = smov 128   ;;  %s357_s19 = smov 8  }
   0xd   :  { %33 = dma.hbm_to_vmem [thread:$0]  %s425_s1, 512, %s28_s16, [#allocation6], %s356_s18, %s356_s18, %s357_s19  }
   0xe   :  { %s358_s22 = smov [#allocation2]   ;;  %s359_s24 = smov [#allocation7]  }
   0xf   :  { %s18_s23 = sshll.u32 %s358_s22, 4  ;;  %s42_s25 = sshll.u32 %s359_s24, 4  ;;  %s19_s23 = int_to_ptr.vmem [resolvable:$true] %s18_s23  ;;  %s43_s25 = int_to_ptr.vmem [resolvable:$true] %s42_s25 }
  0x10   :  { %s297_s26 = scalar_lea.vmem %s19_s23, 128  ;;  %p302_p6 = scmp.lt.s32.totalorder %s19_s23, %s19_s23 }
  0x11   :  { %p298_p5 = scmp.ne.s32.totalorder %s19_s23, %s297_s26  ;;  %p303_p7 = scmp.lt.s32.totalorder %s297_s26, %s297_s26 }
  0x13   :  { %p304_p8 = por %p303_p7, %p302_p6 }
  0x15   :  { %p305_p9 = pnand %p304_p8, %p298_p5 }
  0x17   :  { %308 = shalt.err (!%p305_p9)
}
  0x18   :  { %21 = dma.hbm_to_vmem [thread:$0]  %s424_s0, 128, %s19_s23, [#allocation3]  }
  0x19   :  { %s317_s29 = scalar_lea.vmem %s43_s25, 128  ;;  %p322_p11 = scmp.lt.s32.totalorder %s43_s25, %s43_s25 }
  0x1a   :  { %p318_p10 = scmp.ne.s32.totalorder %s43_s25, %s317_s29  ;;  %p323_p12 = scmp.lt.s32.totalorder %s317_s29, %s317_s29 }
  0x1c   :  { %p324_p13 = por %p323_p12, %p322_p11 }
  0x1e   :  { %p325_p0 = pnand %p324_p13, %p318_p10 }
  0x20   :  { %328 = shalt.err (!%p325_p0)
}
  0x21   :  { %45 = dma.hbm_to_vmem [thread:$0]  %s427_s3, 128, %s43_s25, [#allocation6]  }
  0x22   :  { %349 = dma.done.wait [#allocation3], 128  }
  0x23   :  { %350 = vsyncadd [#allocation3], 4294967168 }
  0x24   :  { %351 = dma.done.wait [#allocation6], 640  }
  0x25   :  { %352 = vsyncadd [#allocation6], 4294966656  ;;  %v360_v0 = vmov 0.0   ;;  %vm361_vm0 = vmmov 0   ;;  %v59_v1 = vld [vmem:[#allocation5 + $0x18] sm:$0xff]  ;;  %v58_v2 = vld [vmem:[#allocation5 + $0x10] sm:$0xff]  ;;  %v143_v6 = vlaneseq }
  0x26   :  { %250 = vmatprep.subr.mxu0 %v360_v0  ;;  %258 = vmatprep.mubr.msk.f32.mxu0 %vm361_vm0, %v360_v0  ;;  %v57_v3 = vld [vmem:[#allocation5 + $0x8] sm:$0xff]  ;;  %v56_v4 = vld [vmem:[#allocation5] sm:$0xff]  ;;  %v55_v5 = vld [vmem:[#allocation2] sm:$0xff]  ;;  %vm68_vm1 = vcmask 261120  }
  0x27   :  { %251 = vmatpush3.msra.mxu0 %v59_v1  ;;  %v402_v7 = vand.u32 127, %v143_v6  ;;  %v240_v8 = vld [vmem:[%s426_s2] ss:$0 sm:$0xff]  ;;  %v61_v9 = vld [vmem:[#allocation7] sm:$0xff]  ;;  %s362_s2 = smov [#allocation8]  }
  0x28   :  { %252 = vmatprep.subr.mxu0 %v360_v0  ;;  %s230_s5 = sshll.u32 %s362_s2, 4  ;;  %s231_s5 = int_to_ptr.vmem [resolvable:$true] %s230_s5 }
  0x29   :  { %253 = vmatpush3.msra.mxu0 %v58_v2  ;;  %vm197_vm2 = vcmp.ge.s32.totalorder %v402_v7, 24  ;;  %vm198_vm3 = vcmp.lt.s32.totalorder %v402_v7, 32  ;;  %vm146_vm5 = vcmp.lt.s32.totalorder %v402_v7, 8  ;;  %vm171_vm6 = vcmp.ge.s32.totalorder %v402_v7, 8  ;;  %s329_s6 = scalar_lea.vmem %s231_s5, 128  ;;  %p334_p2 = scmp.lt.s32.totalorder %s231_s5, %s231_s5 }
  0x2a   :  { %254 = vmatprep.subr.mxu0 %v360_v0  ;;  %vm199_vm4 = vmand %vm197_vm2, %vm198_vm3  ;;  %vm172_vm7 = vcmp.lt.s32.totalorder %v402_v7, 24  ;;  %p330_p1 = scmp.ne.s32.totalorder %s231_s5, %s329_s6  ;;  %p335_p3 = scmp.lt.s32.totalorder %s329_s6, %s329_s6 }
  0x2b   :  { %255 = vmatpush3.msra.mxu0 %v57_v3  ;;  %vm173_vm8 = vmand %vm171_vm6, %vm172_vm7 }
  0x2c   :  { %256 = vmatprep.subr.mxu0 %v360_v0  ;;  %p336_p4 = por %p335_p3, %p334_p2 }
  0x2d   :  { %257 = vmatpush3.msra.mxu0 %v56_v4 }
  0x2e   :  { %259 = vmatmul.mubr.msk.f32.vlgmr.msra.gmra.mxu0 %vm68_vm1, %v55_v5  ;;  %p337_p5 = pnand %p336_p4, %p330_p1 }
  0xee   :  { %v138_v10 = vpop.f32.mrf.mxu0 }
  0xef   :  { %v139_v11 = vadd.f32 %v240_v8, %v138_v10 }
  0xf0   :  { %v260_v12 = vpop.f32.mrf.mxu0 }
  0xf1   :  { %v142_v13 = vadd.f32 %v139_v11, %v61_v9 }
  0xf3   :  { %v200_v14 = vsel %vm199_vm4, %v142_v13, -inf  ;;  %v148_v15 = vsel %vm146_vm5, %v142_v13, -inf  ;;  %v174_v16 = vsel %vm173_vm8, %v142_v13, -inf }
  0xf4   :  { %201 = vmax.xlane.f32.xlu1 %v200_v14  ;;  %149 = vmax.xlane.f32.xlu0 %v148_v15 }
  0xf8   :  { %175 = vmax.xlane.f32.xlu0 %v174_v16 }
 0x17d   :  { %v202_v17 = vpop.xlane.xlu1 %201  ;;  %v150_v18 = vpop.xlane.xlu0 %149 }
 0x17e   :  { %vm203_vm9 = vcmp.eq.f32.partialorder %v200_v14, %v202_v17  ;;  %vm151_vm10 = vcmp.eq.f32.partialorder %v148_v15, %v150_v18 }
 0x17f   :  { %v204_v19 = vsel %vm203_vm9, %v402_v7, 2147483647  ;;  %v152_v20 = vsel %vm151_vm10, %v402_v7, 2147483647 }
 0x180   :  { %v154_v21 = vshra.s32 %v152_v20, 16  ;;  %v206_v24 = vshra.s32 %v204_v19, 16  ;;  %v153_v29 = vand.u32 65535, %v152_v20  ;;  %v205_v30 = vand.u32 65535, %v204_v19 }
 0x181   :  { %v176_v22 = vpop.xlane.xlu0 %175 }
 0x182   :  { %vm177_vm11 = vcmp.eq.f32.partialorder %v174_v16, %v176_v22  ;;  %v156_v23 = vcvt.s32.f32 %v154_v21  ;;  %v208_v27 = vcvt.s32.f32 %v206_v24  ;;  %v155_v33 = vcvt.s32.f32 %v153_v29 }
 0x183   :  { %v178_v25 = vsel %vm177_vm11, %v402_v7, 2147483647  ;;  %v207_v37 = vcvt.s32.f32 %v205_v30 }
 0x184   :  { %157 = vmin.xlane.f32.xlu1 %v156_v23  ;;  %v180_v26 = vshra.s32 %v178_v25, 16  ;;  %v179_v31 = vand.u32 65535, %v178_v25 }
 0x186   :  { %v182_v28 = vcvt.s32.f32 %v180_v26  ;;  %v181_v38 = vcvt.s32.f32 %v179_v31 }
 0x188   :  { %209 = vmin.xlane.f32.xlu1 %v208_v27  ;;  %183 = vmin.xlane.f32.xlu0 %v182_v28 }
 0x20d   :  { %v158_v32 = vpop.xlane.xlu1 %157 }
 0x20e   :  { %vm159_vm12 = vcmp.eq.f32.partialorder %v156_v23, %v158_v32  ;;  %v164_v41 = vcvt.f32.s32 %v158_v32 }
 0x20f   :  { %v160_v34 = vsel %vm159_vm12, %v155_v33, inf }
 0x210   :  { %161 = vmin.xlane.f32.xlu0 %v160_v34  ;;  %v165_v43 = vshll.u32 %v164_v41, 16 }
 0x211   :  { %v210_v35 = vpop.xlane.xlu1 %209  ;;  %v184_v36 = vpop.xlane.xlu0 %183 }
 0x212   :  { %vm211_vm13 = vcmp.eq.f32.partialorder %v208_v27, %v210_v35  ;;  %vm185_vm14 = vcmp.eq.f32.partialorder %v182_v28, %v184_v36  ;;  %v216_v44 = vcvt.f32.s32 %v210_v35  ;;  %v190_v45 = vcvt.f32.s32 %v184_v36 }
 0x213   :  { %v212_v39 = vsel %vm211_vm13, %v207_v37, inf  ;;  %v186_v40 = vsel %vm185_vm14, %v181_v38, inf }
 0x214   :  { %213 = vmin.xlane.f32.xlu0 %v212_v39  ;;  %187 = vmin.xlane.f32.xlu1 %v186_v40  ;;  %v217_v50 = vshll.u32 %v216_v44, 16  ;;  %v191_v51 = vshll.u32 %v190_v45, 16 }
 0x299   :  { %v162_v42 = vpop.xlane.xlu0 %161 }
 0x29a   :  { %v163_v46 = vcvt.f32.s32 %v162_v42 }
 0x29c   :  { %v166_v47 = vadd.s32 %v165_v43, %v163_v46 }
 0x29d   :  { %v214_v48 = vpop.xlane.xlu0 %213  ;;  %v188_v49 = vpop.xlane.xlu1 %187 }
 0x29e   :  { %v215_v52 = vcvt.f32.s32 %v214_v48  ;;  %v189_v53 = vcvt.f32.s32 %v188_v49  ;;  %vm167_vm15 = vcmp.eq.s32.totalorder %v402_v7, %v166_v47 }
 0x29f   :  { %v242_v56 = vsel %vm167_vm15, 1.0, %v360_v0 }
 0x2a0   :  { %v218_v54 = vadd.s32 %v217_v50, %v215_v52  ;;  %v192_v55 = vadd.s32 %v191_v51, %v189_v53 }
 0x2a2   :  { %vm219_vm0 = vcmp.eq.s32.totalorder %v402_v7, %v218_v54  ;;  %vm193_vm1 = vcmp.eq.s32.totalorder %v402_v7, %v192_v55 }
 0x2a3   :  { %v243_v57 = vsel %vm193_vm1, 1.0, %v360_v0  ;;  %v244_v59 = vsel %vm219_vm0, 1.0, %v360_v0 }
 0x2a4   :  { %v196_v58 = vadd.f32 %v243_v57, %v242_v56 }
 0x2a6   :  { %v222_v60 = vadd.f32 %v244_v59, %v196_v58 }
 0x2a8   :  { %223 = vst [vmem:[#allocation8] sm:$0xff] %v222_v60 }
 0x2a9   :  { %340 = shalt.err (!%p337_p5)
}
 0x2aa   :  { %233 = dma.vmem_to_hbm [thread:$0]  %s231_s5, 128, %s428_s4, [#allocation4]  }
 0x2ab   :  { %353 = dma.done.wait [#allocation4], 128  }
 0x2ac   :  { %354 = vsyncadd [#allocation4], 4294967168 }
 0x2ad   :  { %237 = vsyncpa [#allocation3], 1 }
 0x2ae   :  { %238 = vsyncpa [#allocation6], 1 }
 0x2af   :  { %239 = vsyncpa [#allocation4], 1 }

</bundles_post_ra>
